<compile_context>
chip_gen: v5e
topology: v5e:2x2
jax: 0.10.0
libtpu: 0.0.40
codegen_flags: <defaults>
</compile_context>

<pallas_src>
import functools

import jax
import jax.numpy as jnp
from jax.experimental import pallas as pl
from jax.experimental.pallas import tpu as pltpu


def _round_up(x: int, m: int) -> int:
    return ((x + m - 1) // m) * m


def pref_query_kernel(u_ref, w_ref, b_ref, o_ref):
    # (TB, D_in) @ (D_in, D_out_p) on the MXU, accumulate in f32.
    y = jnp.dot(u_ref[...], w_ref[...], preferred_element_type=jnp.float32)
    y = y + b_ref[...]                       # (1, D_out_p) broadcast, f32
    o_ref[...] = jnp.tanh(y).astype(o_ref.dtype)   # EUP tanh, lane-dense store


@functools.partial(jax.jit, static_argnames=("block_b",))
def pref_query_wu(u_id, weight, bias, *, block_b: int = 2048):
    """Compute tanh(u_id @ weight + bias).

    u_id:   (B, D_in)
    weight: (D_in, D_out)   -- i.e. PyTorch Linear weight transposed
    bias:   (D_out,)
    returns (B, D_out) float32
    """
    B, D_in = u_id.shape
    if weight.shape[0] != D_in:
        raise ValueError(
            f"weight must be (D_in, D_out)=( {D_in}, * ); got {weight.shape}. "
            "Pass PyTorch Linear weight transposed."
        )
    D_out = weight.shape[1]

    # ---- lane-dense output: pad D_out to a multiple of 128 -----------------
    D_out_p = _round_up(D_out, 128)
    if D_out_p != D_out:
        weight = jnp.pad(weight, ((0, 0), (0, D_out_p - D_out)))
        bias = jnp.pad(bias, (0, D_out_p - D_out))
    bias2d = bias.reshape(1, D_out_p).astype(jnp.float32)

    # ---- batch grid: tile B, pad to a multiple of the tile -----------------
    tb = min(block_b, _round_up(B, 8))       # sublane-aligned batch tile
    B_p = _round_up(B, tb)
    if B_p != B:
        u_id = jnp.pad(u_id, ((0, B_p - B), (0, 0)))
    grid = (B_p // tb,)

    bytes_accessed = (
        u_id.size * u_id.dtype.itemsize
        + weight.size * weight.dtype.itemsize
        + bias2d.size * 4
        + B_p * D_out_p * 4
    )
    cost = pl.CostEstimate(
        flops=2 * B_p * D_in * D_out_p,
        transcendentals=B_p * D_out_p,
        bytes_accessed=bytes_accessed,
    )

    out_padded = pl.pallas_call(
        pref_query_kernel,
        out_shape=jax.ShapeDtypeStruct((B_p, D_out_p), jnp.float32),
        grid=grid,
        in_specs=[
            pl.BlockSpec((tb, D_in), lambda i: (i, 0)),        # u_id tile
            pl.BlockSpec((D_in, D_out_p), lambda i: (0, 0)),   # weight resident
            pl.BlockSpec((1, D_out_p), lambda i: (0, 0)),      # bias resident
        ],
        out_specs=pl.BlockSpec((tb, D_out_p), lambda i: (i, 0)),
        compiler_params=pltpu.CompilerParams(
            dimension_semantics=("parallel",),
        ),
        cost_estimate=cost,
    )(u_id, weight, bias2d)

    # Strip batch + lane padding outside the kernel.
    return out_padded[:B, :D_out]


if __name__ == "__main__":
    # Module hyper-params (defaults from PrefQueryWu), small batch.
    B = 4
    DIM_EMB_U_ID = 50       # Linear in_features
    DIM_PREF_QUERY = 200    # Linear out_features

    key = jax.random.PRNGKey(0)
    k_x, k_w, k_b = jax.random.split(key, 3)

    # Deterministic parameter init (mimics PyTorch Linear's U(-1/sqrt(in), 1/sqrt(in))).
    bound = 1.0 / (DIM_EMB_U_ID ** 0.5)
    weight = jax.random.uniform(
        k_w, (DIM_EMB_U_ID, DIM_PREF_QUERY), jnp.float32, -bound, bound
    )  # stored as (in, out) == PyTorch weight.T
    bias = jax.random.uniform(k_b, (DIM_PREF_QUERY,), jnp.float32, -bound, bound)

    # Example embedded user ids.
    u_id = jax.random.normal(k_x, (B, DIM_EMB_U_ID), jnp.float32)

    out = pref_query_wu(u_id, weight, bias)
    out = jax.block_until_ready(out)

    # Reference check in plain JAX.
    ref = jnp.tanh(u_id @ weight + bias)
    assert out.shape == (B, DIM_PREF_QUERY)
    assert jnp.allclose(out, ref, atol=1e-5, rtol=1e-5)

    print("KERNEL_OK")
</pallas_src>

<mosaic_0001>
module attributes {stable_mosaic.version = 11 : i64} {
  func.func @pref_query_kernel(%arg0: i32, %arg1: memref<8x50xf32, #tpu.memory_space<vmem>>, %arg2: memref<50x256xf32, #tpu.memory_space<vmem>>, %arg3: memref<1x256xf32, #tpu.memory_space<vmem>>, %arg4: memref<8x256xf32, #tpu.memory_space<vmem>>) attributes {dimension_semantics = [#tpu.dimension_semantics<parallel>], iteration_bounds = array<i64: 1>, scalar_prefetch = 0 : i64, scratch_operands = 0 : i64, tpu.core_type = #tpu.core_type<tc>, window_params = [{transform_indices = @transform_0, window_bounds = array<i64: 8, 50>}, {pipeline_mode = #tpu.pipeline_mode<synchronous>, transform_indices = @transform_1, window_bounds = array<i64: 50, 256>}, {pipeline_mode = #tpu.pipeline_mode<synchronous>, transform_indices = @transform_2, window_bounds = array<i64: 1, 256>}, {transform_indices = @transform_3, window_bounds = array<i64: 8, 256>}]} {
    %c0 = arith.constant 0 : index
    %c0_0 = arith.constant 0 : index
    %0 = vector.load %arg1[%c0, %c0_0] : memref<8x50xf32, #tpu.memory_space<vmem>>, vector<8x50xf32>
    %c0_1 = arith.constant 0 : index
    %c0_2 = arith.constant 0 : index
    %1 = vector.load %arg2[%c0_1, %c0_2] : memref<50x256xf32, #tpu.memory_space<vmem>>, vector<50x256xf32>
    %cst = arith.constant dense<0.000000e+00> : vector<8x256xf32>
    %2 = tpu.matmul %0, %1, %cst {dimension_numbers = #tpu.dot_dimension_numbers<[1], [0], [0], [1], [0, 0, 1, 1], [], []>} : vector<8x50xf32>, vector<50x256xf32>, vector<8x256xf32> -> vector<8x256xf32>
    %c0_3 = arith.constant 0 : index
    %c0_4 = arith.constant 0 : index
    %3 = vector.load %arg3[%c0_3, %c0_4] : memref<1x256xf32, #tpu.memory_space<vmem>>, vector<1x256xf32>
    %4 = vector.broadcast %3 : vector<1x256xf32> to vector<8x256xf32>
    %5 = arith.addf %2, %4 : vector<8x256xf32>
    %6 = math.tanh %5 : vector<8x256xf32>
    %c0_5 = arith.constant 0 : index
    %c0_6 = arith.constant 0 : index
    %7 = vector.load %arg4[%c0_5, %c0_6] : memref<8x256xf32, #tpu.memory_space<vmem>>, vector<8x256xf32>
    tpu.vector_store %arg4[%c0_5, %c0_6], %6 {strides = array<i32>} : memref<8x256xf32, #tpu.memory_space<vmem>>, vector<8x256xf32>,
    return
  }
  func.func @transform_0(%arg0: i32) -> (i32, i32) {
    %c0_i32 = arith.constant 0 : i32
    %c0_i32_0 = arith.constant 0 : i32
    return %arg0, %c0_i32 : i32, i32
  }
  func.func @transform_1(%arg0: i32) -> (i32, i32) {
    %c0_i32 = arith.constant 0 : i32
    %c0_i32_0 = arith.constant 0 : i32
    %c0_i32_1 = arith.constant 0 : i32
    return %c0_i32, %c0_i32_0 : i32, i32
  }
  func.func @transform_2(%arg0: i32) -> (i32, i32) {
    %c0_i32 = arith.constant 0 : i32
    %c0_i32_0 = arith.constant 0 : i32
    %c0_i32_1 = arith.constant 0 : i32
    return %c0_i32, %c0_i32_0 : i32, i32
  }
  func.func @transform_3(%arg0: i32) -> (i32, i32) {
    %c0_i32 = arith.constant 0 : i32
    %c0_i32_0 = arith.constant 0 : i32
    return %arg0, %c0_i32 : i32, i32
  }
}

</mosaic_0001>

<bundles_post_ra>
// kernel: pref_query_wu.1
= control target key start
LH: loop header
LB: loop body
LE: loop exit
PB: predicated region body
PF: predicated region fallthrough
CT: control target
= control target key end

     0   :  { %vm39_vm0 = vcmask 1041408   ;;  %vm35_vm1 = vcmask 408576   ;;  %s176_s1 = inlined_call_operand.vmem [shape: f32[50,256], index: 1, kind: input, shape index: {}]   ;;  %s177_s0 = inlined_call_operand.vmem [shape: f32[8,50], index: 0, kind: input, shape index: {}]   ;;  %s178_s2 = inlined_call_operand.vmem [shape: f32[1,256], index: 2, kind: input, shape index: {}]   ;;  %s179_s3 = inlined_call_operand.vmem [shape: f32[8,256], index: 3, kind: output, shape index: {}]  }
   0x1   :  { %v27_v0 = vld [vmem:[%s176_s1 + $0x60] sm:$0x3]  ;;  %v28_v1 = vld [vmem:[%s176_s1 + $0x68] sm:$0x3]  ;;  %v25_v2 = vld [vmem:[%s176_s1 + $0x50] sm:$0xff] }
   0x2   :  { %94 = vmatpush.msk.msra.mxu0 %vm39_vm0, %v27_v0  ;;  %96 = vmatpush.msk.msra.mxu1 %vm39_vm0, %v28_v1  ;;  %v26_v3 = vld [vmem:[%s176_s1 + $0x58] sm:$0xff]  ;;  %v23_v4 = vld [vmem:[%s176_s1 + $0x40] sm:$0xff]  ;;  %v24_v5 = vld [vmem:[%s176_s1 + $0x48] sm:$0xff] }
   0x3   :  { %v21_v6 = vld [vmem:[%s176_s1 + $0x30] sm:$0xff]  ;;  %v22_v7 = vld [vmem:[%s176_s1 + $0x38] sm:$0xff]  ;;  %v19_v8 = vld [vmem:[%s176_s1 + $0x20] sm:$0xff] }
   0x4   :  { %56 = vmatpush.msra.mxu0 %v25_v2  ;;  %76 = vmatpush.msra.mxu1 %v26_v3  ;;  %v20_v9 = vld [vmem:[%s176_s1 + $0x28] sm:$0xff]  ;;  %v17_v10 = vld [vmem:[%s176_s1 + $0x10] sm:$0xff]  ;;  %v18_v11 = vld [vmem:[%s176_s1 + $0x18] sm:$0xff] }
   0x5   :  { %v15_v12 = vld [vmem:[%s176_s1] sm:$0xff]  ;;  %v16_v13 = vld [vmem:[%s176_s1 + $0x8] sm:$0xff] }
   0x6   :  { %57 = vmatpush.msra.mxu0 %v23_v4  ;;  %77 = vmatpush.msra.mxu1 %v24_v5  ;;  %v14_v14 = vld [vmem:[%s177_s0] sm:$0xff] }
   0x7   :  { %v29_v15 = vld [vmem:[%s178_s2] sm:$0x3] }
   0x8   :  { %58 = vmatpush.msra.mxu0 %v21_v6  ;;  %78 = vmatpush.msra.mxu1 %v22_v7  ;;  %v31_v16 = vperm.slane %v29_v15, 0  ;;  %v32_v17 = vperm.slane %v29_v15, 1 }
   0xa   :  { %59 = vmatpush.msra.mxu0 %v19_v8  ;;  %79 = vmatpush.msra.mxu1 %v20_v9 }
   0xc   :  { %60 = vmatpush.msra.mxu0 %v17_v10  ;;  %80 = vmatpush.msra.mxu1 %v18_v11 }
   0xe   :  { %61 = vmatpush.msra.mxu0 %v15_v12  ;;  %81 = vmatpush.msra.mxu1 %v16_v13 }
   0xf   :  { %95 = vmatmul.msk.f32.vlgmr.msra.gmra.mxu0 %vm35_vm1, %v14_v14  ;;  %97 = vmatmul.msk.f32.vlgmr.msra.gmra.mxu1 %vm35_vm1, %v14_v14 }
  0x8c   :  { %v63_v18 = vpop.f32.mrf.mxu0  ;;  %v83_v19 = vpop.f32.mrf.mxu1 }
  0x8d   :  { %v64_v20 = vadd.f32 %v63_v18, %v31_v16  ;;  %v84_v21 = vadd.f32 %v83_v19, %v32_v17 }
  0x8f   :  { %98 = vtanh.f32 %v64_v20 }
  0x90   :  { %100 = vtanh.f32 %v84_v21 }
  0x95   :  { %v99_v22 = vpop.eup %98 }
  0x96   :  { %v101_v23 = vpop.eup %100  ;;  %88 = vst [vmem:[%s179_s3] sm:$0xff] %v99_v22 }
  0x97   :  { %89 = vst [vmem:[%s179_s3 + $0x8] sm:$0xff] %v101_v23 }

</bundles_post_ra>
